<compile_context>
chip_gen: v7x
topology: tpu7x:2x2x1
jax: 0.10.0
libtpu: 0.0.40
codegen_flags: <defaults>
</compile_context>

<pallas_src>
import jax
import jax.numpy as jnp
from jax import lax
from jax.experimental import pallas as pl
from jax.experimental.pallas import tpu as pltpu


def _round_up(a, b):
    return ((a + b - 1) // b) * b


# Conservative per-step VMEM working-set budget (fits v5e/v6e/v7x comfortably).
_VMEM_BUDGET = 24 << 20


def _make_kernel(rows, w, w_out, length, step, tile, transpose_out):
    """Build the kernel body; all shape params are static Python ints."""
    inv_len = float(1.0 / length)
    has_edge = (rows % tile) != 0

    def kernel(x_ref, o_ref):
        x = x_ref[...].astype(jnp.float32)
        if has_edge:
            # Neutralize over-read rows of the partial edge tile: they pool to
            # 1.0 -> log(1) = 0 (and are masked on store anyway).
            row0 = pl.program_id(0) * tile
            rid = row0 + lax.broadcasted_iota(jnp.int32, (tile, w), 0)
            x = jnp.where(rid < rows, x, jnp.float32(1.0))
        x2 = x * x  # VPU

        # Pooling matrix built in-kernel: pm[j, i] = 1/length on window j.
        col = lax.broadcasted_iota(jnp.int32, (w_out, w), 1)
        start = lax.broadcasted_iota(jnp.int32, (w_out, w), 0) * step
        pm = jnp.where(
            (col >= start) & (col < start + length),
            jnp.float32(inv_len),
            jnp.float32(0.0),
        )

        if transpose_out:
            # pooled[j, r] = sum_i pm[j, i] * x2[r, i]  -> (w_out, tile)
            pooled = lax.dot_general(
                pm, x2,
                dimension_numbers=(((1,), (1,)), ((), ())),
                preferred_element_type=jnp.float32,
                precision=lax.Precision.HIGHEST,
            )
        else:
            # pooled[r, j] = sum_i x2[r, i] * pm[j, i]  -> (tile, w_out)
            pooled = lax.dot_general(
                x2, pm,
                dimension_numbers=(((1,), (1,)), ((), ())),
                preferred_element_type=jnp.float32,
                precision=lax.Precision.HIGHEST,
            )
        o_ref[...] = jnp.log(pooled)  # EUP

    return kernel


def _choose_tile(rows, w, w_out, in_bytes, row_tile):
    """Largest 128-multiple rows-tile that fits the VMEM budget, >=2 grid steps
    when rows allow (so v7x's two TensorCores both get work)."""
    tile = min(_round_up(row_tile, 128), _round_up(rows, 128))
    tile = max(tile, 128)
    if rows > 128 and tile >= rows:
        tile = max(128, _round_up(-(-rows // 2), 128))

    def budget(t):
        return (2 * t * w * in_bytes      # x tile, double-buffered
                + t * w * 4               # f32 x^2 temp
                + w_out * w * 4           # in-kernel pooling matrix
                + 2 * w_out * t * 4)      # output tile, double-buffered

    while tile > 128 and budget(tile) > _VMEM_BUDGET:
        tile -= 128
    return tile, budget(tile)


def power_layer(x, length, step, *, row_tile=512):
    """JAX/Pallas equivalent of PowerLayer(dim, length, step).forward(x).

    x: (N, C, H, W) array (NCHW, like the PyTorch module).
    returns: (N, C, H, W_out) float32, W_out = (W - length)//step + 1
    """
    n, c, h, w = x.shape
    if w < length:
        raise ValueError(f"W={w} must be >= pooling length={length}")
    w_out = (w - length) // step + 1
    rows = n * c * h

    x2d = x.reshape(rows, w)
    in_bytes = jnp.dtype(x2d.dtype).itemsize

    transpose_out = w_out < 128  # lane-dense store heuristic (see header)
    tile, vmem_budget = _choose_tile(rows, w, w_out, in_bytes, row_tile)
    grid = (pl.cdiv(rows, tile),)

    if transpose_out:
        out_shape = jax.ShapeDtypeStruct((w_out, rows), jnp.float32)
        out_spec = pl.BlockSpec((w_out, tile), lambda i: (0, i))
    else:
        out_shape = jax.ShapeDtypeStruct((rows, w_out), jnp.float32)
        out_spec = pl.BlockSpec((tile, w_out), lambda i: (i, 0))

    vmem_limit = int(min(48 << 20, max(32 << 20, 3 * vmem_budget // 2)))

    kernel = _make_kernel(rows, w, w_out, length, step, tile, transpose_out)

    out = pl.pallas_call(
        kernel,
        out_shape=out_shape,
        grid=grid,
        in_specs=[pl.BlockSpec((tile, w), lambda i: (i, 0))],
        out_specs=out_spec,
        compiler_params=pltpu.CompilerParams(
            dimension_semantics=("parallel",),
            vmem_limit_bytes=vmem_limit,
        ),
    )(x2d)

    if transpose_out:
        out = out.T  # small layout plumbing only when w_out < 128
    return out.reshape(n, c, h, w_out)


def power_layer_ref(x, length, step):
    """Pure-JAX reference: torch.log(AvgPool2d((1,length),(1,step))(x**2))."""
    x2 = jnp.asarray(x, jnp.float32) ** 2
    w = x2.shape[-1]
    w_out = (w - length) // step + 1
    cols = [
        jnp.mean(x2[..., i * step:i * step + length], axis=-1, keepdims=True)
        for i in range(w_out)
    ]
    return jnp.log(jnp.concatenate(cols, axis=-1))


if __name__ == "__main__":
    # PowerLayer(dim, length, step) — `dim` is stored but unused in forward,
    # and AvgPool2d has no learnable parameters, so nothing to initialize.
    key = jax.random.PRNGKey(0)

    # Case 1: primary small NCHW input (rows aligned to 128, w_out < 128).
    length, step = 4, 2
    x = jax.random.normal(key, (2, 4, 16, 16), dtype=jnp.float32)
    out = jax.block_until_ready(power_layer(x, length, step))
    ref = power_layer_ref(x, length, step)
    assert out.shape == ref.shape == (2, 4, 16, (16 - length) // step + 1)
    assert jnp.allclose(out, ref, rtol=1e-5, atol=1e-5), "case 1 mismatch"

    # Case 2: unaligned rows (136) -> multi-step grid + masked edge tile.
    k2 = jax.random.PRNGKey(1)
    x2 = jax.random.normal(k2, (2, 4, 17, 33), dtype=jnp.float32)
    out2 = jax.block_until_ready(power_layer(x2, 5, 3))
    ref2 = power_layer_ref(x2, 5, 3)
    assert out2.shape == ref2.shape
    assert jnp.allclose(out2, ref2, rtol=1e-5, atol=1e-5), "case 2 mismatch"

    # Case 3: w_out >= 128 -> natural (rows, w_out) output layout, no transpose.
    k3 = jax.random.PRNGKey(2)
    x3 = jax.random.normal(k3, (2, 4, 16, 131), dtype=jnp.float32)
    out3 = jax.block_until_ready(power_layer(x3, 4, 1))
    ref3 = power_layer_ref(x3, 4, 1)
    assert out3.shape == ref3.shape == (2, 4, 16, 128)
    assert jnp.allclose(out3, ref3, rtol=1e-5, atol=1e-5), "case 3 mismatch"

    print("KERNEL_OK")
</pallas_src>

<mosaic_0001>
module attributes {stable_mosaic.version = 11 : i64} {
  func.func @kernel(%arg0: i32, %arg1: memref<128x16xf32, #tpu.memory_space<vmem>>, %arg2: memref<7x128xf32, #tpu.memory_space<vmem>>) attributes {dimension_semantics = [#tpu.dimension_semantics<parallel>], iteration_bounds = array<i64: 1>, scalar_prefetch = 0 : i64, scratch_operands = 0 : i64, tpu.core_type = #tpu.core_type<tc>, window_params = [{transform_indices = @transform_0, window_bounds = array<i64: 128, 16>}, {transform_indices = @transform_1, window_bounds = array<i64: 7, 128>}]} {
    %c0 = arith.constant 0 : index
    %c0_0 = arith.constant 0 : index
    %0 = vector.load %arg1[%c0, %c0_0] : memref<128x16xf32, #tpu.memory_space<vmem>>, vector<128x16xf32>
    %1 = arith.mulf %0, %0 : vector<128x16xf32>
    %2 = tpu.iota {dimensions = array<i32: 1>} : vector<7x16xi32>
    %3 = tpu.iota {dimensions = array<i32: 0>} : vector<7x16xi32>
    %c2_i32 = arith.constant 2 : i32
    %4 = vector.broadcast %c2_i32 : i32 to vector<7x16xi32>
    %5 = arith.muli %3, %4 : vector<7x16xi32>
    %6 = arith.cmpi sge, %2, %5 : vector<7x16xi32>
    %c4_i32 = arith.constant 4 : i32
    %7 = vector.broadcast %c4_i32 : i32 to vector<7x16xi32>
    %8 = arith.addi %5, %7 : vector<7x16xi32>
    %9 = arith.cmpi slt, %2, %8 : vector<7x16xi32>
    %10 = arith.andi %6, %9 : vector<7x16xi1>
    %cst = arith.constant 2.500000e-01 : f32
    %cst_1 = arith.constant 0.000000e+00 : f32
    %11 = vector.broadcast %cst : f32 to vector<7x16xf32>
    %12 = vector.broadcast %cst_1 : f32 to vector<7x16xf32>
    %13 = arith.select %10, %11, %12 : vector<7x16xi1>, vector<7x16xf32>
    %cst_2 = arith.constant dense<0.000000e+00> : vector<7x128xf32>
    %14 = tpu.matmul %13, %1, %cst_2 {dimension_numbers = #tpu.dot_dimension_numbers<[1], [1], [0], [0], [0, 0, 1, 0], [], []>, precision = #tpu.contract_precision<fp32>} : vector<7x16xf32>, vector<128x16xf32>, vector<7x128xf32> -> vector<7x128xf32>
    %15 = math.log %14 : vector<7x128xf32>
    %c0_3 = arith.constant 0 : index
    %c0_4 = arith.constant 0 : index
    %16 = vector.load %arg2[%c0_3, %c0_4] : memref<7x128xf32, #tpu.memory_space<vmem>>, vector<7x128xf32>
    tpu.vector_store %arg2[%c0_3, %c0_4], %15 {strides = array<i32>} : memref<7x128xf32, #tpu.memory_space<vmem>>, vector<7x128xf32>,
    return
  }
  func.func @transform_0(%arg0: i32) -> (i32, i32) {
    %c0_i32 = arith.constant 0 : i32
    %c0_i32_0 = arith.constant 0 : i32
    return %arg0, %c0_i32 : i32, i32
  }
  func.func @transform_1(%arg0: i32) -> (i32, i32) {
    %c0_i32 = arith.constant 0 : i32
    %c0_i32_0 = arith.constant 0 : i32
    return %c0_i32, %arg0 : i32, i32
  }
}

</mosaic_0001>

<bundles_post_ra>
// kernel: tpu_custom_call.1
= control target key start
LH: loop header
LB: loop body
LE: loop exit
PB: predicated region body
PF: predicated region fallthrough
CT: control target
= control target key end

     0   :  { %vm51_vm0 = vcmask 130048   ;;  %v1259_v3 = vmov 0.0|0.0   ;;  %vm1260_vm1 = vmmov 0   ;;  %v1261_v9 = vmov 0.0   ;;  %s1569_s0 = inlined_call_operand.vmem [shape: f32[128,16], index: 0, kind: input, shape index: {}]   ;;  %s1570_s1 = inlined_call_operand.hbm [shape: f32[7,128], index: 1, kind: output, shape index: {}]  }
   0x1   :  { %v9_v0 = vld [vmem:[%s1569_s0] sm:$0xff]  ;;  %v10_v1 = vld [vmem:[%s1569_s0 + $0x8] sm:$0xff]  ;;  %v11_v2 = vld [vmem:[%s1569_s0 + $0x10] sm:$0xff]  ;;  %1076 = vmatprep.subr.bf16.mxu1 %v1259_v3  ;;  %1148 = vmatprep.subr.bf16.mxu0 %v1259_v3 }
   0x2   :  { %v25_v4 = vmul.f32 %v9_v0, %v9_v0  ;;  %v26_v5 = vmul.f32 %v10_v1, %v10_v1  ;;  %v12_v6 = vld [vmem:[%s1569_s0 + $0x18] sm:$0xff]  ;;  %v27_v7 = vmul.f32 %v11_v2, %v11_v2  ;;  %898 = vmatprep.mubr.msk.f32.mxu1 %vm1260_vm1, %v1261_v9  ;;  %1003 = vmatprep.mubr.msk.f32.mxu0 %vm1260_vm1, %v1261_v9  ;;  %v13_v17 = vld [vmem:[%s1569_s0 + $0x20] sm:$0xff]  ;;  %v14_v18 = vld [vmem:[%s1569_s0 + $0x28] sm:$0xff] }
   0x3   :  { %v28_v8 = vmul.f32 %v12_v6, %v12_v6 }
   0x4   :  { %v56_v10 = vsel %vm51_vm0, %v25_v4, 0  ;;  %v59_v11 = vsel %vm51_vm0, %v26_v5, 0  ;;  %v62_v14 = vsel %vm51_vm0, %v27_v7, 0 }
   0x5   :  { %v104_v12 = vand.u32 4294901760, %v56_v10  ;;  %v107_v13 = vand.u32 4294901760, %v59_v11  ;;  %v65_v15 = vsel %vm51_vm0, %v28_v8, 0 }
   0x7   :  { %v1295_v16 = vpack.c.bf16 %v107_v13, %v104_v12 }
   0x8   :  { %6 = vsyncpa [#allocation3], 0  ;;  %v110_v19 = vand.u32 4294901760, %v62_v14  ;;  %v113_v20 = vand.u32 4294901760, %v65_v15  ;;  %v29_v21 = vmul.f32 %v13_v17, %v13_v17  ;;  %v30_v22 = vmul.f32 %v14_v18, %v14_v18  ;;  %v15_v26 = vld [vmem:[%s1569_s0 + $0x30] sm:$0xff]  ;;  %v16_v27 = vld [vmem:[%s1569_s0 + $0x38] sm:$0xff] }
   0x9   :  { %1078 = vmatpush3.bf16.xpose.msra.mxu1 %v1295_v16  ;;  %1150 = vmatpush3.bf16.xpose.msra.mxu0 %v1295_v16  ;;  %v31_v30 = vmul.f32 %v15_v26, %v15_v26  ;;  %v32_v31 = vmul.f32 %v16_v27, %v16_v27  ;;  %v17_v35 = vld [vmem:[%s1569_s0 + $0x40] sm:$0xff]  ;;  %v18_v36 = vld [vmem:[%s1569_s0 + $0x48] sm:$0xff]  ;;  %v19_v41 = vld [vmem:[%s1569_s0 + $0x50] sm:$0xff]  ;;  %v41_v43 = vlaneseq  ;;  %v1345_v52 = vsub.f32 %v56_v10, %v104_v12 }
   0xa   :  { %1079 = vmatprep.subr.bf16.mxu1 %v1259_v3  ;;  %1151 = vmatprep.subr.bf16.mxu0 %v1259_v3  ;;  %v1307_v23 = vpack.c.bf16 %v113_v20, %v110_v19  ;;  %v68_v24 = vsel %vm51_vm0, %v29_v21, 0  ;;  %v71_v25 = vsel %vm51_vm0, %v30_v22, 0  ;;  %v33_v39 = vmul.f32 %v17_v35, %v17_v35  ;;  %v20_v42 = vld [vmem:[%s1569_s0 + $0x58] sm:$0xff]  ;;  %v21_v63 = vld [vmem:[%s1569_s0 + $0x60] sm:$0xff]  ;;  %v22_v0 = vld [vmem:[%s1569_s0 + $0x68] sm:$0xff] }
   0xb   :  { %v116_v28 = vand.u32 4294901760, %v68_v24  ;;  %v119_v29 = vand.u32 4294901760, %v71_v25  ;;  %v74_v33 = vsel %vm51_vm0, %v31_v30, 0  ;;  %v77_v34 = vsel %vm51_vm0, %v32_v31, 0 }
   0xc   :  { %v122_v37 = vand.u32 4294901760, %v74_v33  ;;  %v125_v38 = vand.u32 4294901760, %v77_v34  ;;  %v34_v40 = vmul.f32 %v18_v36, %v18_v36  ;;  %v80_v45 = vsel %vm51_vm0, %v33_v39, 0 }
   0xd   :  { %v1321_v32 = vpack.c.bf16 %v119_v29, %v116_v28  ;;  %v35_v47 = vmul.f32 %v19_v41, %v19_v41  ;;  %v36_v48 = vmul.f32 %v20_v42, %v20_v42  ;;  %v128_v49 = vand.u32 4294901760, %v80_v45 }
   0xe   :  { %v1341_v44 = vpack.c.bf16 %v125_v38, %v122_v37  ;;  %v83_v46 = vsel %vm51_vm0, %v34_v40, 0  ;;  %v44_v51 = vshrl.u32 %v41_v43, 7  ;;  %v1347_v53 = vsub.f32 %v59_v11, %v107_v13 }
   0xf   :  { %v131_v50 = vand.u32 4294901760, %v83_v46  ;;  %v1351_v54 = vsub.f32 %v62_v14, %v110_v19  ;;  %v1353_v55 = vsub.f32 %v65_v15, %v113_v20  ;;  %v1355_v56 = vsub.f32 %v68_v24, %v116_v28  ;;  %v23_v24 = vld [vmem:[%s1569_s0 + $0x70] sm:$0xff] }
  0x10   :  { %v1359_v57 = vsub.f32 %v71_v25, %v119_v29  ;;  %v1361_v58 = vsub.f32 %v74_v33, %v122_v37  ;;  %v86_v59 = vsel %vm51_vm0, %v35_v47, 0  ;;  %v89_v60 = vsel %vm51_vm0, %v36_v48, 0  ;;  %v24_v25 = vld [vmem:[%s1569_s0 + $0x78] sm:$0xff]  ;;  %s1262_s0 = smov [#allocation2]  }
  0x11   :  { %1081 = vmatpush3.bf16.xpose.msra.mxu1 %v1307_v23  ;;  %1153 = vmatpush3.bf16.xpose.msra.mxu0 %v1307_v23  ;;  %v1365_v61 = vsub.f32 %v77_v34, %v125_v38  ;;  %v1367_v62 = vpack.c.bf16 %v131_v50, %v128_v49  ;;  %v45_v1 = vmul.u32 2, %v44_v51  ;;  %v1125_v2 = vpack.c.bf16 %v1347_v53, %v1345_v52  ;;  %s753_s9 = sshll.u32 %s1262_s0, 4  ;;  %s754_s9 = int_to_ptr.vmem [resolvable:$true] %s753_s9 }
  0x12   :  { %1082 = vmatprep.subr.bf16.mxu1 %v1259_v3  ;;  %1154 = vmatprep.subr.bf16.mxu0 %v1259_v3  ;;  %v1377_v4 = vsub.f32 %v80_v45, %v128_v49  ;;  %v1379_v5 = vsub.f32 %v83_v46, %v131_v50  ;;  %v1128_v6 = vpack.c.bf16 %v1353_v55, %v1351_v54  ;;  %v134_v8 = vand.u32 4294901760, %v86_v59  ;;  %s1235_s10 = scalar_lea.vmem %s754_s9, 128  ;;  %p1240_p1 = scmp.lt.s32.totalorder %s754_s9, %s754_s9 }
  0x13   :  { %v1131_v7 = vpack.c.bf16 %v1359_v57, %v1355_v56  ;;  %v137_v10 = vand.u32 4294901760, %v89_v60  ;;  %v37_v11 = vmul.f32 %v21_v63, %v21_v63  ;;  %v38_v12 = vmul.f32 %v22_v0, %v22_v0  ;;  %p1236_p0 = scmp.ne.s32.totalorder %s754_s9, %s1235_s10  ;;  %p1241_p2 = scmp.lt.s32.totalorder %s1235_s10, %s1235_s10 }
  0x14   :  { %v1134_v13 = vpack.c.bf16 %v1365_v61, %v1361_v58  ;;  %v1137_v14 = vpack.c.bf16 %v1379_v5, %v1377_v4  ;;  %v1389_v15 = vsub.f32 %v86_v59, %v134_v8  ;;  %v42_v18 = vand.u32 127, %v41_v43 }
  0x15   :  { %v1391_v17 = vsub.f32 %v89_v60, %v137_v10  ;;  %v47_v19 = vadd.s32 4, %v45_v1  ;;  %v92_v21 = vsel %vm51_vm0, %v37_v11, 0  ;;  %v95_v22 = vsel %vm51_vm0, %v38_v12, 0  ;;  %p1242_p3 = por %p1241_p2, %p1240_p1 }
  0x16   :  { %vm46_vm2 = vcmp.ge.s32.totalorder %v42_v18, %v45_v1  ;;  %v1407_v26 = vpack.c.bf16 %v137_v10, %v134_v8  ;;  %v140_v27 = vand.u32 4294901760, %v92_v21  ;;  %v143_v28 = vand.u32 4294901760, %v95_v22 }
  0x17   :  { %v1140_v20 = vpack.c.bf16 %v1391_v17, %v1389_v15  ;;  %vm48_vm3 = vcmp.lt.s32.totalorder %v42_v18, %v47_v19  ;;  %v39_v29 = vmul.f32 %v23_v24, %v23_v24  ;;  %v40_v30 = vmul.f32 %v24_v25, %v24_v25  ;;  %p1243_p4 = pnand %p1242_p3, %p1236_p0 }
  0x18   :  { %vm49_vm4 = vmand %vm46_vm2, %vm48_vm3  ;;  %v1409_v31 = vsub.f32 %v92_v21, %v140_v27  ;;  %v1411_v33 = vsub.f32 %v95_v22, %v143_v28  ;;  %v1424_v38 = vpack.c.bf16 %v143_v28, %v140_v27  ;;  %v197_v46 = vand.u32 4294901760, %v1345_v52 }
  0x19   :  { %1084 = vmatpush3.bf16.xpose.msra.mxu1 %v1321_v32  ;;  %1156 = vmatpush3.bf16.xpose.msra.mxu0 %v1321_v32  ;;  %v1418_v34 = vsel %vm49_vm4, 0.25, %v1261_v9  ;;  %v98_v36 = vsel %vm51_vm0, %v39_v29, 0  ;;  %v101_v37 = vsel %vm51_vm0, %v40_v30, 0  ;;  %v204_v47 = vand.u32 4294901760, %v1347_v53 }
  0x1a   :  { %1085 = vmatprep.subr.bf16.mxu1 %v1259_v3  ;;  %1157 = vmatprep.subr.bf16.mxu0 %v1259_v3  ;;  %v1143_v35 = vpack.c.bf16 %v1411_v33, %v1409_v31  ;;  %v53_v39 = vsel %vm51_vm0, %v1418_v34, 0  ;;  %v146_v40 = vand.u32 4294901760, %v98_v36  ;;  %v149_v41 = vand.u32 4294901760, %v101_v37 }
  0x1b   :  { %v1432_v45 = vsub.f32 %v53_v39, %v53_v39  ;;  %v198_v51 = vsub.f32 %v1345_v52, %v197_v46  ;;  %v205_v59 = vsub.f32 %v1347_v53, %v204_v47  ;;  %v211_v1 = vand.u32 4294901760, %v1351_v54 }
  0x1c   :  { %v1428_v42 = vsub.f32 %v98_v36, %v146_v40  ;;  %v1430_v43 = vsub.f32 %v101_v37, %v149_v41  ;;  %v1443_v50 = vpack.c.bf16 %v149_v41, %v146_v40  ;;  %v218_v8 = vand.u32 4294901760, %v1353_v55 }
  0x1d   :  { %v186_v49 = vand.u32 4294901760, %v1432_v45  ;;  %v199_v63 = vand.u32 4294901760, %v198_v51  ;;  %v206_v0 = vand.u32 4294901760, %v205_v59  ;;  %v1173_v12 = vpack.c.bf16 %v204_v47, %v197_v46 }
  0x1e   :  { %v1146_v48 = vpack.c.bf16 %v1430_v43, %v1428_v42  ;;  %v212_v18 = vsub.f32 %v1351_v54, %v211_v1  ;;  %v219_v19 = vsub.f32 %v1353_v55, %v218_v8  ;;  %v225_v24 = vand.u32 4294901760, %v1355_v56 }
  0x1f   :  { %v187_v60 = vsub.f32 %v1432_v45, %v186_v49  ;;  %v1101_v11 = vpack.c.bf16 %v206_v0, %v199_v63  ;;  %v232_v25 = vand.u32 4294901760, %v1359_v57  ;;  %v1176_v28 = vpack.c.bf16 %v218_v8, %v211_v1 }
  0x20   :  { %v213_v21 = vand.u32 4294901760, %v212_v18  ;;  %v220_v22 = vand.u32 4294901760, %v219_v19  ;;  %v226_v29 = vsub.f32 %v1355_v56, %v225_v24  ;;  %v239_v39 = vand.u32 4294901760, %v1361_v58 }
  0x21   :  { %1087 = vmatpush3.bf16.xpose.msra.mxu1 %v1341_v44  ;;  %1159 = vmatpush3.bf16.xpose.msra.mxu0 %v1341_v44  ;;  %v188_v10 = vand.u32 4294901760, %v187_v60  ;;  %v233_v30 = vsub.f32 %v1359_v57, %v232_v25  ;;  %v246_v40 = vand.u32 4294901760, %v1365_v61  ;;  %v1179_v46 = vpack.c.bf16 %v232_v25, %v225_v24 }
  0x22   :  { %1088 = vmatprep.subr.bf16.mxu1 %v1259_v3  ;;  %1160 = vmatprep.subr.bf16.mxu0 %v1259_v3  ;;  %v1104_v27 = vpack.c.bf16 %v220_v22, %v213_v21  ;;  %v227_v36 = vand.u32 4294901760, %v226_v29  ;;  %v240_v47 = vsub.f32 %v1361_v58, %v239_v39  ;;  %v253_v60 = vand.u32 4294901760, %v1377_v4 }
  0x23   :  { %v234_v37 = vand.u32 4294901760, %v233_v30  ;;  %v260_v63 = vand.u32 4294901760, %v1379_v5  ;;  %v1182_v1 = vpack.c.bf16 %v246_v40, %v239_v39  ;;  %v267_v18 = vand.u32 4294901760, %v1389_v15 }
  0x24   :  { %v241_v51 = vand.u32 4294901760, %v240_v47  ;;  %v254_v8 = vsub.f32 %v1377_v4, %v253_v60  ;;  %v274_v19 = vand.u32 4294901760, %v1391_v17  ;;  %v281_v29 = vand.u32 4294901760, %v1409_v31 }
  0x25   :  { %v1107_v41 = vpack.c.bf16 %v234_v37, %v227_v36  ;;  %v1185_v22 = vpack.c.bf16 %v260_v63, %v253_v60  ;;  %v268_v24 = vsub.f32 %v1389_v15, %v267_v18  ;;  %v288_v30 = vand.u32 4294901760, %v1411_v33 }
  0x26   :  { %v275_v25 = vsub.f32 %v1391_v17, %v274_v19  ;;  %v1188_v37 = vpack.c.bf16 %v274_v19, %v267_v18  ;;  %v282_v39 = vsub.f32 %v1409_v31, %v281_v29  ;;  %v295_v47 = vand.u32 4294901760, %v1428_v42 }
  0x28   :  { %v296_v60 = vsub.f32 %v1428_v42, %v295_v47 }
  0x29   :  { %1090 = vmatpush3.bf16.xpose.msra.mxu1 %v1367_v62  ;;  %1162 = vmatpush3.bf16.xpose.msra.mxu0 %v1367_v62 }
  0x2a   :  { %1091 = vmatprep.subr.bf16.mxu1 %v1259_v3  ;;  %1163 = vmatprep.subr.bf16.mxu0 %v1259_v3 }
  0x31   :  { %1093 = vmatpush3.bf16.xpose.msra.mxu1 %v1407_v26  ;;  %1165 = vmatpush3.bf16.xpose.msra.mxu0 %v1407_v26 }
  0x32   :  { %1094 = vmatprep.subr.bf16.mxu1 %v1259_v3  ;;  %1166 = vmatprep.subr.bf16.mxu0 %v1259_v3 }
  0x39   :  { %1096 = vmatpush3.bf16.xpose.msra.mxu1 %v1424_v38  ;;  %1168 = vmatpush3.bf16.xpose.msra.mxu0 %v1424_v38 }
  0x3a   :  { %1097 = vmatprep.subr.bf16.mxu1 %v1259_v3  ;;  %1169 = vmatprep.subr.bf16.mxu0 %v1259_v3 }
  0x41   :  { %1099 = vmatpush3.bf16.xpose.msra.mxu1 %v1443_v50  ;;  %1171 = vmatpush3.bf16.xpose.msra.mxu0 %v1443_v50 }
  0x42   :  { %1100 = vmatprep.subr.bf16.mxu1 %v1259_v3  ;;  %1172 = vmatprep.subr.bf16.mxu0 %v1259_v3 }
  0x48   :  { %899 = vmatmul.mubr.f32.vlgmr.msra.gmra.mrb[0].mxu1 %v188_v10  ;;  %1004 = vmatmul.mubr.f32.vlgmr.msra.gmra.mrb[0].mxu0 %v186_v49  ;;  %v247_v49 = vsub.f32 %v1365_v61, %v246_v40  ;;  %v261_v10 = vsub.f32 %v1379_v5, %v260_v63  ;;  %v289_v40 = vsub.f32 %v1411_v33, %v288_v30 }
  0x49   :  { %1102 = vmatpush3.bf16.xpose.msra.mxu1 %v1101_v11  ;;  %1174 = vmatpush3.bf16.xpose.msra.mxu0 %v1173_v12  ;;  %v255_v11 = vand.u32 4294901760, %v254_v8 }
  0x4a   :  { %1103 = vmatprep.subr.bf16.mxu1 %v1259_v3  ;;  %1175 = vmatprep.subr.bf16.mxu0 %v1259_v3  ;;  %v248_v59 = vand.u32 4294901760, %v247_v49  ;;  %v262_v12 = vand.u32 4294901760, %v261_v10  ;;  %v302_v49 = vand.u32 4294901760, %v1430_v43 }
  0x4b   :  { %933 = vmatprep.mubr.msk.f32.mxu1 %vm1260_vm1, %v1261_v9  ;;  %1038 = vmatprep.mubr.msk.f32.mxu0 %vm1260_vm1, %v1261_v9 }
  0x4c   :  { %v1110_v0 = vpack.c.bf16 %v248_v59, %v241_v51  ;;  %v1113_v21 = vpack.c.bf16 %v262_v12, %v255_v11  ;;  %v1191_v59 = vpack.c.bf16 %v288_v30, %v281_v29  ;;  %v303_v63 = vsub.f32 %v1430_v43, %v302_v49 }
  0x4d   :  { %v1194_v10 = vpack.c.bf16 %v302_v49, %v295_v47 }
  0x51   :  { %1105 = vmatpush3.bf16.xpose.msra.mxu1 %v1104_v27  ;;  %1177 = vmatpush3.bf16.xpose.msra.mxu0 %v1176_v28  ;;  %v269_v27 = vand.u32 4294901760, %v268_v24  ;;  %v276_v28 = vand.u32 4294901760, %v275_v25 }
  0x52   :  { %1106 = vmatprep.subr.bf16.mxu1 %v1259_v3  ;;  %1178 = vmatprep.subr.bf16.mxu0 %v1259_v3 }
  0x53   :  { %v1116_v36 = vpack.c.bf16 %v276_v28, %v269_v27 }
  0x59   :  { %1108 = vmatpush3.bf16.xpose.msra.mxu1 %v1107_v41  ;;  %1180 = vmatpush3.bf16.xpose.msra.mxu0 %v1179_v46  ;;  %v283_v41 = vand.u32 4294901760, %v282_v39  ;;  %v290_v46 = vand.u32 4294901760, %v289_v40 }
  0x5a   :  { %1109 = vmatprep.subr.bf16.mxu1 %v1259_v3  ;;  %1181 = vmatprep.subr.bf16.mxu0 %v1259_v3 }
  0x5b   :  { %v1119_v51 = vpack.c.bf16 %v290_v46, %v283_v41 }
  0x61   :  { %1111 = vmatpush3.bf16.xpose.msra.mxu1 %v1110_v0  ;;  %1183 = vmatpush3.bf16.xpose.msra.mxu0 %v1182_v1  ;;  %v297_v0 = vand.u32 4294901760, %v296_v60  ;;  %v304_v1 = vand.u32 4294901760, %v303_v63 }
  0x62   :  { %1112 = vmatprep.subr.bf16.mxu1 %v1259_v3  ;;  %1184 = vmatprep.subr.bf16.mxu0 %v1259_v3 }
  0x63   :  { %v1122_v8 = vpack.c.bf16 %v304_v1, %v297_v0 }
  0x69   :  { %1114 = vmatpush3.bf16.xpose.msra.mxu1 %v1113_v21  ;;  %1186 = vmatpush3.bf16.xpose.msra.mxu0 %v1185_v22 }
  0x6a   :  { %1115 = vmatprep.subr.bf16.mxu1 %v1259_v3  ;;  %1187 = vmatprep.subr.bf16.mxu0 %v1259_v3 }
  0x71   :  { %1117 = vmatpush3.bf16.xpose.msra.mxu1 %v1116_v36  ;;  %1189 = vmatpush3.bf16.xpose.msra.mxu0 %v1188_v37 }
  0x72   :  { %1118 = vmatprep.subr.bf16.mxu1 %v1259_v3  ;;  %1190 = vmatprep.subr.bf16.mxu0 %v1259_v3 }
  0x79   :  { %1120 = vmatpush3.bf16.xpose.msra.mxu1 %v1119_v51  ;;  %1192 = vmatpush3.bf16.xpose.msra.mxu0 %v1191_v59 }
  0x7a   :  { %1121 = vmatprep.subr.bf16.mxu1 %v1259_v3  ;;  %1193 = vmatprep.subr.bf16.mxu0 %v1259_v3 }
  0x81   :  { %1123 = vmatpush3.bf16.xpose.msra.mxu1 %v1122_v8  ;;  %1195 = vmatpush3.bf16.xpose.msra.mxu0 %v1194_v10 }
  0x82   :  { %1124 = vmatprep.subr.bf16.mxu1 %v1259_v3  ;;  %1196 = vmatprep.subr.bf16.mxu0 %v1259_v3 }
  0x88   :  { %934 = vmatmul.mubr.msk.f32.vlgmr.msra.gmra.mrb[0].mxu1 %vm51_vm0, %v1418_v34  ;;  %1039 = vmatmul.mubr.msk.f32.vlgmr.msra.gmra.mrb[0].mxu0 %vm51_vm0, %v1418_v34 }
  0x89   :  { %1126 = vmatpush3.bf16.xpose.msra.mxu1 %v1125_v2  ;;  %1198 = vmatpush3.bf16.xpose.msra.mxu0 %v1295_v16 }
  0x8a   :  { %1127 = vmatprep.subr.bf16.mxu1 %v1259_v3  ;;  %1199 = vmatprep.subr.bf16.mxu0 %v1259_v3 }
  0x8b   :  { %968 = vmatprep.mubr.msk.f32.mxu1 %vm1260_vm1, %v1261_v9  ;;  %1073 = vmatprep.mubr.msk.f32.mxu0 %vm1260_vm1, %v1261_v9 }
  0x91   :  { %1129 = vmatpush3.bf16.xpose.msra.mxu1 %v1128_v6  ;;  %1201 = vmatpush3.bf16.xpose.msra.mxu0 %v1307_v23 }
  0x92   :  { %1130 = vmatprep.subr.bf16.mxu1 %v1259_v3  ;;  %1202 = vmatprep.subr.bf16.mxu0 %v1259_v3 }
  0x99   :  { %1132 = vmatpush3.bf16.xpose.msra.mxu1 %v1131_v7  ;;  %1204 = vmatpush3.bf16.xpose.msra.mxu0 %v1321_v32 }
  0x9a   :  { %1133 = vmatprep.subr.bf16.mxu1 %v1259_v3  ;;  %1205 = vmatprep.subr.bf16.mxu0 %v1259_v3 }
  0xa1   :  { %1135 = vmatpush3.bf16.xpose.msra.mxu1 %v1134_v13  ;;  %1207 = vmatpush3.bf16.xpose.msra.mxu0 %v1341_v44 }
  0xa2   :  { %1136 = vmatprep.subr.bf16.mxu1 %v1259_v3  ;;  %1208 = vmatprep.subr.bf16.mxu0 %v1259_v3 }
  0xa9   :  { %1138 = vmatpush3.bf16.xpose.msra.mxu1 %v1137_v14  ;;  %1210 = vmatpush3.bf16.xpose.msra.mxu0 %v1367_v62 }
  0xaa   :  { %1139 = vmatprep.subr.bf16.mxu1 %v1259_v3  ;;  %1211 = vmatprep.subr.bf16.mxu0 %v1259_v3 }
  0xb1   :  { %1141 = vmatpush3.bf16.xpose.msra.mxu1 %v1140_v20  ;;  %1213 = vmatpush3.bf16.xpose.msra.mxu0 %v1407_v26 }
  0xb2   :  { %1142 = vmatprep.subr.bf16.mxu1 %v1259_v3  ;;  %1214 = vmatprep.subr.bf16.mxu0 %v1259_v3 }
  0xb9   :  { %1144 = vmatpush3.bf16.xpose.msra.mxu1 %v1143_v35  ;;  %1216 = vmatpush3.bf16.xpose.msra.mxu0 %v1424_v38 }
  0xba   :  { %1145 = vmatprep.subr.bf16.mxu1 %v1259_v3  ;;  %1217 = vmatprep.subr.bf16.mxu0 %v1259_v3 }
  0xc1   :  { %1147 = vmatpush3.bf16.xpose.msra.mxu1 %v1146_v48  ;;  %1219 = vmatpush3.bf16.xpose.msra.mxu0 %v1443_v50 }
  0xc8   :  { %969 = vmatmul.mubr.f32.vlgmr.msra.gmra.mrb[0].mxu1 %v1432_v45  ;;  %1074 = vmatmul.mubr.msk.f32.vlgmr.msra.gmra.mrb[0].mxu0 %vm51_vm0, %v1418_v34 }
 0x19b   :  { %v445_v9 = vpop.f32.mrb[0].mxu1  ;;  %v740_v16 = vpop.f32.mrb[0].mxu0 }
 0x19c   :  { %v1220_v23 = vadd.f32 %v740_v16, %v445_v9  ;;  %v970_v32 = vpop.f32.mrb[1].mxu1  ;;  %v1075_v44 = vpop.f32.mrb[1].mxu0 }
 0x19e   :  { %1233 = vlog2.f32 %v1220_v23 }
 0x1a8   :  { %v1234_v3 = vpop.eup %1233 }
 0x1a9   :  { %v745_v52 = vmul.f32 0.6931472, %v1234_v3 }
 0x1ab   :  { %746 = vst [vmem:[#allocation2] sm:$0x7f] %v745_v52 }
 0x1ac   :  { %1246 = shalt.err (!%p1243_p4)
}
 0x1ad   :  { %s1247_s13 = scalar_lea.hbm %s1570_s1, 128 }
 0x1ae   :  { %p1248_p5 = scmp.ne.s32.totalorder %s1570_s1, %s1247_s13  ;;  %p1251_p6 = scmp.lt.u32.totalorder %s1247_s13, %s1570_s1 }
 0x1b0   :  { %p1253_p7 = pnand %p1251_p6, %p1248_p5 }
 0x1b2   :  { %1256 = shalt.err (!%p1253_p7)
}
 0x1b3   :  { %756 = dma.vmem_to_hbm [thread:$0]  %s754_s9, 128, %s1570_s1, [#allocation3]  }
 0x1b4   :  { %1257 = dma.done.wait [#allocation3], 128  }
 0x1b5   :  { %1258 = vsyncadd [#allocation3], 4294967168 }
 0x1b6   :  { %760 = vsyncpa [#allocation3], 1 }

</bundles_post_ra>
